<compile_context>
chip_gen: v7x
topology: tpu7x:2x2x1
jax: 0.10.0
libtpu: 0.0.40
codegen_flags: <defaults>
</compile_context>

<pallas_src>
import jax
import jax.numpy as jnp
from jax.experimental import pallas as pl
from jax.experimental.pallas import tpu as pltpu

NUM_CLASSES = 4
FEAT_DIM = 512        # fc_ann1 expects 512-d tabular features
BACKBONE_OUT = 1000   # timm head output dim (handled via offline composition)
OUT_PAD = 128         # lane-dense padded classifier width
BN_EPS = 1e-5


# ----------------------------- Pallas kernel --------------------------------
def simplecnn_kernel(
    x_ref,       # [B, C, H*W]  image, f32, spatial on lanes
    feat_ref,    # [B, 512]     tabular features, f32
    w_in_ref,    # [C, 512]     bf16  (pool-proj ∘ fc1+bn1, 1/(H*W) folded in)
    w256_ref,    # [1408, 256]  bf16  rows: w2 | wa1 | wc_x | wc_f
    w128_ref,    # [640, 128]   bf16  rows: wa2 | w3 | w4(padded)
    sh_ref,      # [1, 1664]    f32   lanes: s_in | s2 | sa1 | sa2 | sc | s3 | b4
    out_ref,     # [B, 128]     only first NUM_CLASSES columns meaningful
):
    f32, bf16 = jnp.float32, jnp.bfloat16

    def dot(h, w):
        # bf16 x bf16 MXU matmul, f32 accumulation.
        return jnp.dot(h.astype(bf16), w, preferred_element_type=f32)

    # backbone stand-in: sum-pool over spatial (mean's 1/(H*W) folded into w_in),
    # then the composed (C->1000 projection ∘ fc1+bn1) matmul, relu.
    pooled = jnp.sum(x_ref[...], axis=-1)                                        # [B, C]
    x = jnp.maximum(dot(pooled, w_in_ref[...]) + sh_ref[:, 0:512], 0.0)          # [B, 512]

    # image branch: fc2 -> bn2 -> relu  (dropout = identity in eval)
    x = jnp.maximum(dot(x, w256_ref[0:512, :]) + sh_ref[:, 512:768], 0.0)        # [B, 256]

    # tabular branch: fc_ann1 -> bn -> relu, fc_ann2 -> bn -> relu
    f = jnp.maximum(dot(feat_ref[...], w256_ref[512:1024, :])
                    + sh_ref[:, 768:1024], 0.0)                                  # [B, 256]
    f = jnp.maximum(dot(f, w128_ref[0:256, :]) + sh_ref[:, 1024:1152], 0.0)      # [B, 128]

    # combine: torch.cat + Linear(384,256) == x @ wc_x + f @ wc_f  (no concat)
    h = jnp.maximum(dot(x, w256_ref[1024:1280, :])
                    + dot(f, w256_ref[1280:1408, :])
                    + sh_ref[:, 1152:1408], 0.0)                                 # [B, 256]
    h = jnp.maximum(dot(h, w128_ref[256:512, :]) + sh_ref[:, 1408:1536], 0.0)    # [B, 128]

    # final classifier (no BN / no ReLU), lane-dense padded to 128 cols
    out_ref[...] = (dot(h, w128_ref[512:640, :])
                    + sh_ref[:, 1536:1664]).astype(out_ref.dtype)                # [B, 128]


# ------------------------------ JAX wrapper ----------------------------------
def _full_spec(shape):
    # one grid step, whole array as a single VMEM block
    return pl.BlockSpec(shape, lambda i: (0,) * len(shape))


@jax.jit
def simplecnn_forward(x_nchw, features, params):
    w_in, w256, w128, shifts = params
    B, C, H, W = x_nchw.shape
    # Pure reshape (no data movement): spatial axis lands on lanes in-kernel.
    x_flat = x_nchw.reshape(B, C, H * W).astype(jnp.float32)
    feats = features.astype(jnp.float32)

    args = (x_flat, feats, w_in, w256, w128, shifts)
    out_padded = pl.pallas_call(
        simplecnn_kernel,
        out_shape=jax.ShapeDtypeStruct((B, OUT_PAD), jnp.float32),
        grid=(1,),
        in_specs=[_full_spec(a.shape) for a in args],
        out_specs=_full_spec((B, OUT_PAD)),
        compiler_params=pltpu.CompilerParams(dimension_semantics=("arbitrary",)),
    )(*args)
    return out_padded[:, :NUM_CLASSES]


# --------------------------- parameter construction --------------------------
def _linear(key, din, dout, scale=0.02):
    kw, kb = jax.random.split(key)
    w = scale * jax.random.normal(kw, (din, dout), jnp.float32)
    b = scale * jax.random.normal(kb, (dout,), jnp.float32)
    return w, b


def _bn(key, dim):
    k1, k2, k3, k4 = jax.random.split(key, 4)
    gamma = 1.0 + 0.05 * jax.random.normal(k1, (dim,), jnp.float32)
    beta = 0.05 * jax.random.normal(k2, (dim,), jnp.float32)
    mean = 0.05 * jax.random.normal(k3, (dim,), jnp.float32)
    var = 1.0 + 0.1 * jnp.abs(jax.random.normal(k4, (dim,), jnp.float32))
    return gamma, beta, mean, var


def _fold_linear_bn(w, b, gamma, beta, mean, var):
    """Eval-mode BN(Linear(x)) == x @ (w*s) + ((b - mean)*s + beta), s = gamma/sqrt(var+eps)."""
    s = gamma / jnp.sqrt(var + BN_EPS)
    w_f = w * s[None, :]
    shift = ((b - mean) * s + beta)[None, :]
    return w_f, shift


def make_params(key, in_channels, hw):
    """Returns (kernel_params, ref_params).

    kernel_params: 4 packed slabs (bf16 weights, f32 shifts) with the linear
    backbone stand-in pre-composed into fc1 and the classifier padded to 128.
    ref_params: unfused f32 pieces for a pure-JAX reference forward pass.
    """
    bf16 = jnp.bfloat16
    ks = jax.random.split(key, 16)

    # backbone stand-in projection C -> 1000
    wp, bp = _linear(ks[0], in_channels, BACKBONE_OUT)

    def folded(kw_key, kbn_key, din, dout):
        w, b = _linear(kw_key, din, dout)
        g, be, m, v = _bn(kbn_key, dout)
        return _fold_linear_bn(w, b, g, be, m, v)

    w1, s1 = folded(ks[1], ks[2], BACKBONE_OUT, 512)       # fc1 + bn1
    w2, s2 = folded(ks[3], ks[4], 512, 256)                # fc2 + bn2
    wa1, sa1 = folded(ks[5], ks[6], FEAT_DIM, 256)         # fc_ann1 + bn_ann1
    wa2, sa2 = folded(ks[7], ks[8], 256, 128)              # fc_ann2 + bn_ann2
    wc, sc = folded(ks[9], ks[10], 384, 256)               # fc_comb + bn_comb
    w3, s3 = folded(ks[11], ks[12], 256, 128)              # fc3 + bn3
    w4, b4 = _linear(ks[13], 128, NUM_CLASSES)             # fc4 (plain)

    # Offline composition (exact, the stand-in is linear):
    #   mean-pool -> wp (+bp) -> w1 (+s1)  ==  sum-pool @ w_in + s_in
    w_in = (wp @ w1) / float(hw)                           # [C, 512]
    s_in = bp[None, :] @ w1 + s1                           # [1, 512]

    wcx, wcf = wc[:256, :], wc[256:, :]                    # split: image / feature part
    w4_pad = jnp.pad(w4, ((0, 0), (0, OUT_PAD - NUM_CLASSES)))
    b4_pad = jnp.pad(b4, (0, OUT_PAD - NUM_CLASSES))[None, :]

    # Packed slabs (row offsets multiples of 16 sublanes, lane offsets multiples of 128).
    w256 = jnp.concatenate([w2, wa1, wcx, wcf], axis=0)            # [1408, 256]
    w128 = jnp.concatenate([wa2, w3, w4_pad], axis=0)              # [640, 128]
    shifts = jnp.concatenate([s_in, s2, sa1, sa2, sc, s3, b4_pad], axis=1)  # [1, 1664]

    kernel_params = (w_in.astype(bf16), w256.astype(bf16), w128.astype(bf16),
                     shifts.astype(jnp.float32))
    ref_params = dict(wp=wp, bp=bp, w1=w1, s1=s1, w2=w2, s2=s2,
                      wa1=wa1, sa1=sa1, wa2=wa2, sa2=sa2,
                      wc=wc, sc=sc, w3=w3, s3=s3, w4=w4, b4=b4)
    return kernel_params, ref_params


# --------------------------- pure-JAX f32 reference ---------------------------
def reference_forward(x_nchw, features, r):
    B, C, H, W = x_nchw.shape
    pooled = jnp.mean(x_nchw.reshape(B, C, H * W), axis=-1)
    xb = pooled @ r["wp"] + r["bp"]                      # backbone stand-in (1000-d)
    x = jax.nn.relu(xb @ r["w1"] + r["s1"])
    x = jax.nn.relu(x @ r["w2"] + r["s2"])
    f = jax.nn.relu(features @ r["wa1"] + r["sa1"])
    f = jax.nn.relu(f @ r["wa2"] + r["sa2"])
    cat = jnp.concatenate([x, f], axis=1)
    h = jax.nn.relu(cat @ r["wc"] + r["sc"])
    h = jax.nn.relu(h @ r["w3"] + r["s3"])
    return h @ r["w4"] + r["b4"]


# ------------------------------------ main -----------------------------------
if __name__ == "__main__":
    key = jax.random.PRNGKey(0)
    k_x, k_f, k_p = jax.random.split(key, 3)

    B, C, H, W = 2, 4, 16, 16           # small NCHW image input
    x = jax.random.normal(k_x, (B, C, H, W), jnp.float32)
    features = jax.random.normal(k_f, (B, FEAT_DIM), jnp.float32)
    kernel_params, ref_params = make_params(k_p, C, H * W)

    out = simplecnn_forward(x, features, kernel_params)
    out = jax.block_until_ready(out)
    assert out.shape == (B, NUM_CLASSES) and out.dtype == jnp.float32

    # tolerance check vs pure-JAX f32 reference (bf16 weights -> ~1e-3 abs error)
    ref = reference_forward(x, features, ref_params)
    max_err = float(jnp.max(jnp.abs(out - ref)))
    assert max_err < 2e-2, f"kernel/reference mismatch: max abs err {max_err}"

    print("KERNEL_OK")
</pallas_src>

<mosaic_0001>
module attributes {stable_mosaic.version = 11 : i64} {
  func.func @simplecnn_kernel(%arg0: i32, %arg1: memref<2x4x256xf32, #tpu.memory_space<vmem>>, %arg2: memref<2x512xf32, #tpu.memory_space<vmem>>, %arg3: memref<4x512xbf16, #tpu.memory_space<vmem>>, %arg4: memref<1408x256xbf16, #tpu.memory_space<vmem>>, %arg5: memref<640x128xbf16, #tpu.memory_space<vmem>>, %arg6: memref<1x1664xf32, #tpu.memory_space<vmem>>, %arg7: memref<2x128xf32, #tpu.memory_space<vmem>>) attributes {dimension_semantics = [#tpu.dimension_semantics<arbitrary>], iteration_bounds = array<i64: 1>, scalar_prefetch = 0 : i64, scratch_operands = 0 : i64, tpu.core_type = #tpu.core_type<tc>, window_params = [{pipeline_mode = #tpu.pipeline_mode<synchronous>, transform_indices = @transform_0, window_bounds = array<i64: 2, 4, 256>}, {pipeline_mode = #tpu.pipeline_mode<synchronous>, transform_indices = @transform_1, window_bounds = array<i64: 2, 512>}, {pipeline_mode = #tpu.pipeline_mode<synchronous>, transform_indices = @transform_2, window_bounds = array<i64: 4, 512>}, {pipeline_mode = #tpu.pipeline_mode<synchronous>, transform_indices = @transform_3, window_bounds = array<i64: 1408, 256>}, {pipeline_mode = #tpu.pipeline_mode<synchronous>, transform_indices = @transform_4, window_bounds = array<i64: 640, 128>}, {pipeline_mode = #tpu.pipeline_mode<synchronous>, transform_indices = @transform_5, window_bounds = array<i64: 1, 1664>}, {pipeline_mode = #tpu.pipeline_mode<synchronous>, transform_indices = @transform_6, window_bounds = array<i64: 2, 128>}]} {
    %c0 = arith.constant 0 : index
    %c0_0 = arith.constant 0 : index
    %c0_1 = arith.constant 0 : index
    %0 = vector.load %arg1[%c0, %c0_0, %c0_1] : memref<2x4x256xf32, #tpu.memory_space<vmem>>, vector<2x4x256xf32>
    %cst = arith.constant dense<0.000000e+00> : vector<2x4xf32>
    %1 = vector.multi_reduction <add>, %0, %cst [2] : vector<2x4x256xf32> to vector<2x4xf32>
    %c0_2 = arith.constant 0 : index
    %c0_3 = arith.constant 0 : index
    %2 = vector.load %arg3[%c0_2, %c0_3] : memref<4x512xbf16, #tpu.memory_space<vmem>>, vector<4x512xbf16>
    %3 = arith.truncf %1 : vector<2x4xf32> to vector<2x4xbf16>
    %cst_4 = arith.constant dense<0.000000e+00> : vector<2x512xf32>
    %4 = tpu.matmul %3, %2, %cst_4 {dimension_numbers = #tpu.dot_dimension_numbers<[1], [0], [0], [1], [0, 0, 1, 1], [], []>} : vector<2x4xbf16>, vector<4x512xbf16>, vector<2x512xf32> -> vector<2x512xf32>
    %c0_5 = arith.constant 0 : index
    %c0_6 = arith.constant 0 : index
    %5 = vector.load %arg6[%c0_5, %c0_6] : memref<1x1664xf32, #tpu.memory_space<vmem>>, vector<1x512xf32>
    %6 = vector.broadcast %5 : vector<1x512xf32> to vector<2x512xf32>
    %7 = arith.addf %4, %6 : vector<2x512xf32>
    %cst_7 = arith.constant 0.000000e+00 : f32
    %8 = vector.broadcast %cst_7 : f32 to vector<2x512xf32>
    %9 = arith.maximumf %7, %8 : vector<2x512xf32>
    %c0_8 = arith.constant 0 : index
    %c0_9 = arith.constant 0 : index
    %10 = vector.load %arg4[%c0_8, %c0_9] : memref<1408x256xbf16, #tpu.memory_space<vmem>>, vector<512x256xbf16>
    %11 = arith.truncf %9 : vector<2x512xf32> to vector<2x512xbf16>
    %cst_10 = arith.constant dense<0.000000e+00> : vector<2x256xf32>
    %12 = tpu.matmul %11, %10, %cst_10 {dimension_numbers = #tpu.dot_dimension_numbers<[1], [0], [0], [1], [0, 0, 1, 1], [], []>} : vector<2x512xbf16>, vector<512x256xbf16>, vector<2x256xf32> -> vector<2x256xf32>
    %c0_11 = arith.constant 0 : index
    %c512 = arith.constant 512 : index
    %13 = vector.load %arg6[%c0_11, %c512] : memref<1x1664xf32, #tpu.memory_space<vmem>>, vector<1x256xf32>
    %14 = vector.broadcast %13 : vector<1x256xf32> to vector<2x256xf32>
    %15 = arith.addf %12, %14 : vector<2x256xf32>
    %cst_12 = arith.constant 0.000000e+00 : f32
    %16 = vector.broadcast %cst_12 : f32 to vector<2x256xf32>
    %17 = arith.maximumf %15, %16 : vector<2x256xf32>
    %c0_13 = arith.constant 0 : index
    %c0_14 = arith.constant 0 : index
    %18 = vector.load %arg2[%c0_13, %c0_14] : memref<2x512xf32, #tpu.memory_space<vmem>>, vector<2x512xf32>
    %c512_15 = arith.constant 512 : index
    %c0_16 = arith.constant 0 : index
    %19 = vector.load %arg4[%c512_15, %c0_16] : memref<1408x256xbf16, #tpu.memory_space<vmem>>, vector<512x256xbf16>
    %20 = arith.truncf %18 : vector<2x512xf32> to vector<2x512xbf16>
    %cst_17 = arith.constant dense<0.000000e+00> : vector<2x256xf32>
    %21 = tpu.matmul %20, %19, %cst_17 {dimension_numbers = #tpu.dot_dimension_numbers<[1], [0], [0], [1], [0, 0, 1, 1], [], []>} : vector<2x512xbf16>, vector<512x256xbf16>, vector<2x256xf32> -> vector<2x256xf32>
    %c0_18 = arith.constant 0 : index
    %c768 = arith.constant 768 : index
    %22 = vector.load %arg6[%c0_18, %c768] : memref<1x1664xf32, #tpu.memory_space<vmem>>, vector<1x256xf32>
    %23 = vector.broadcast %22 : vector<1x256xf32> to vector<2x256xf32>
    %24 = arith.addf %21, %23 : vector<2x256xf32>
    %cst_19 = arith.constant 0.000000e+00 : f32
    %25 = vector.broadcast %cst_19 : f32 to vector<2x256xf32>
    %26 = arith.maximumf %24, %25 : vector<2x256xf32>
    %c0_20 = arith.constant 0 : index
    %c0_21 = arith.constant 0 : index
    %27 = vector.load %arg5[%c0_20, %c0_21] : memref<640x128xbf16, #tpu.memory_space<vmem>>, vector<256x128xbf16>
    %28 = arith.truncf %26 : vector<2x256xf32> to vector<2x256xbf16>
    %cst_22 = arith.constant dense<0.000000e+00> : vector<2x128xf32>
    %29 = tpu.matmul %28, %27, %cst_22 {dimension_numbers = #tpu.dot_dimension_numbers<[1], [0], [0], [1], [0, 0, 1, 1], [], []>} : vector<2x256xbf16>, vector<256x128xbf16>, vector<2x128xf32> -> vector<2x128xf32>
    %c0_23 = arith.constant 0 : index
    %c1024 = arith.constant 1024 : index
    %30 = vector.load %arg6[%c0_23, %c1024] : memref<1x1664xf32, #tpu.memory_space<vmem>>, vector<1x128xf32>
    %31 = vector.broadcast %30 : vector<1x128xf32> to vector<2x128xf32>
    %32 = arith.addf %29, %31 : vector<2x128xf32>
    %cst_24 = arith.constant 0.000000e+00 : f32
    %33 = vector.broadcast %cst_24 : f32 to vector<2x128xf32>
    %34 = arith.maximumf %32, %33 : vector<2x128xf32>
    %c1024_25 = arith.constant 1024 : index
    %c0_26 = arith.constant 0 : index
    %35 = vector.load %arg4[%c1024_25, %c0_26] : memref<1408x256xbf16, #tpu.memory_space<vmem>>, vector<256x256xbf16>
    %36 = arith.truncf %17 : vector<2x256xf32> to vector<2x256xbf16>
    %cst_27 = arith.constant dense<0.000000e+00> : vector<2x256xf32>
    %37 = tpu.matmul %36, %35, %cst_27 {dimension_numbers = #tpu.dot_dimension_numbers<[1], [0], [0], [1], [0, 0, 1, 1], [], []>} : vector<2x256xbf16>, vector<256x256xbf16>, vector<2x256xf32> -> vector<2x256xf32>
    %c1280 = arith.constant 1280 : index
    %c0_28 = arith.constant 0 : index
    %38 = vector.load %arg4[%c1280, %c0_28] : memref<1408x256xbf16, #tpu.memory_space<vmem>>, vector<128x256xbf16>
    %39 = arith.truncf %34 : vector<2x128xf32> to vector<2x128xbf16>
    %cst_29 = arith.constant dense<0.000000e+00> : vector<2x256xf32>
    %40 = tpu.matmul %39, %38, %cst_29 {dimension_numbers = #tpu.dot_dimension_numbers<[1], [0], [0], [1], [0, 0, 1, 1], [], []>} : vector<2x128xbf16>, vector<128x256xbf16>, vector<2x256xf32> -> vector<2x256xf32>
    %41 = arith.addf %37, %40 : vector<2x256xf32>
    %c0_30 = arith.constant 0 : index
    %c1152 = arith.constant 1152 : index
    %42 = vector.load %arg6[%c0_30, %c1152] : memref<1x1664xf32, #tpu.memory_space<vmem>>, vector<1x256xf32>
    %43 = vector.broadcast %42 : vector<1x256xf32> to vector<2x256xf32>
    %44 = arith.addf %41, %43 : vector<2x256xf32>
    %cst_31 = arith.constant 0.000000e+00 : f32
    %45 = vector.broadcast %cst_31 : f32 to vector<2x256xf32>
    %46 = arith.maximumf %44, %45 : vector<2x256xf32>
    %c256 = arith.constant 256 : index
    %c0_32 = arith.constant 0 : index
    %47 = vector.load %arg5[%c256, %c0_32] : memref<640x128xbf16, #tpu.memory_space<vmem>>, vector<256x128xbf16>
    %48 = arith.truncf %46 : vector<2x256xf32> to vector<2x256xbf16>
    %cst_33 = arith.constant dense<0.000000e+00> : vector<2x128xf32>
    %49 = tpu.matmul %48, %47, %cst_33 {dimension_numbers = #tpu.dot_dimension_numbers<[1], [0], [0], [1], [0, 0, 1, 1], [], []>} : vector<2x256xbf16>, vector<256x128xbf16>, vector<2x128xf32> -> vector<2x128xf32>
    %c0_34 = arith.constant 0 : index
    %c1408 = arith.constant 1408 : index
    %50 = vector.load %arg6[%c0_34, %c1408] : memref<1x1664xf32, #tpu.memory_space<vmem>>, vector<1x128xf32>
    %51 = vector.broadcast %50 : vector<1x128xf32> to vector<2x128xf32>
    %52 = arith.addf %49, %51 : vector<2x128xf32>
    %cst_35 = arith.constant 0.000000e+00 : f32
    %53 = vector.broadcast %cst_35 : f32 to vector<2x128xf32>
    %54 = arith.maximumf %52, %53 : vector<2x128xf32>
    %c512_36 = arith.constant 512 : index
    %c0_37 = arith.constant 0 : index
    %55 = vector.load %arg5[%c512_36, %c0_37] : memref<640x128xbf16, #tpu.memory_space<vmem>>, vector<128x128xbf16>
    %56 = arith.truncf %54 : vector<2x128xf32> to vector<2x128xbf16>
    %cst_38 = arith.constant dense<0.000000e+00> : vector<2x128xf32>
    %57 = tpu.matmul %56, %55, %cst_38 {dimension_numbers = #tpu.dot_dimension_numbers<[1], [0], [0], [1], [0, 0, 1, 1], [], []>} : vector<2x128xbf16>, vector<128x128xbf16>, vector<2x128xf32> -> vector<2x128xf32>
    %c0_39 = arith.constant 0 : index
    %c1536 = arith.constant 1536 : index
    %58 = vector.load %arg6[%c0_39, %c1536] : memref<1x1664xf32, #tpu.memory_space<vmem>>, vector<1x128xf32>
    %59 = vector.broadcast %58 : vector<1x128xf32> to vector<2x128xf32>
    %60 = arith.addf %57, %59 : vector<2x128xf32>
    %c0_40 = arith.constant 0 : index
    %c0_41 = arith.constant 0 : index
    %61 = vector.load %arg7[%c0_40, %c0_41] : memref<2x128xf32, #tpu.memory_space<vmem>>, vector<2x128xf32>
    tpu.vector_store %arg7[%c0_40, %c0_41], %60 {strides = array<i32>} : memref<2x128xf32, #tpu.memory_space<vmem>>, vector<2x128xf32>,
    return
  }
  func.func @transform_0(%arg0: i32) -> (i32, i32, i32) {
    %c0_i32 = arith.constant 0 : i32
    %c0_i32_0 = arith.constant 0 : i32
    %c0_i32_1 = arith.constant 0 : i32
    %c0_i32_2 = arith.constant 0 : i32
    return %c0_i32, %c0_i32_0, %c0_i32_1 : i32, i32, i32
  }
  func.func @transform_1(%arg0: i32) -> (i32, i32) {
    %c0_i32 = arith.constant 0 : i32
    %c0_i32_0 = arith.constant 0 : i32
    %c0_i32_1 = arith.constant 0 : i32
    return %c0_i32, %c0_i32_0 : i32, i32
  }
  func.func @transform_2(%arg0: i32) -> (i32, i32) {
    %c0_i32 = arith.constant 0 : i32
    %c0_i32_0 = arith.constant 0 : i32
    %c0_i32_1 = arith.constant 0 : i32
    return %c0_i32, %c0_i32_0 : i32, i32
  }
  func.func @transform_3(%arg0: i32) -> (i32, i32) {
    %c0_i32 = arith.constant 0 : i32
    %c0_i32_0 = arith.constant 0 : i32
    %c0_i32_1 = arith.constant 0 : i32
    return %c0_i32, %c0_i32_0 : i32, i32
  }
  func.func @transform_4(%arg0: i32) -> (i32, i32) {
    %c0_i32 = arith.constant 0 : i32
    %c0_i32_0 = arith.constant 0 : i32
    %c0_i32_1 = arith.constant 0 : i32
    return %c0_i32, %c0_i32_0 : i32, i32
  }
  func.func @transform_5(%arg0: i32) -> (i32, i32) {
    %c0_i32 = arith.constant 0 : i32
    %c0_i32_0 = arith.constant 0 : i32
    %c0_i32_1 = arith.constant 0 : i32
    return %c0_i32, %c0_i32_0 : i32, i32
  }
  func.func @transform_6(%arg0: i32) -> (i32, i32) {
    %c0_i32 = arith.constant 0 : i32
    %c0_i32_0 = arith.constant 0 : i32
    %c0_i32_1 = arith.constant 0 : i32
    return %c0_i32, %c0_i32_0 : i32, i32
  }
}

</mosaic_0001>

<bundles_post_ra>
// kernel: simplecnn_forward.1
= control target key start
LH: loop header
LB: loop body
LE: loop exit
PB: predicated region body
PF: predicated region fallthrough
CT: control target
= control target key end

     0   :  { %11 = vsyncpa [#allocation3], 0  ;;  %s2969_s0 = inlined_call_operand.vmem [shape: f32[2,4,256], index: 0, kind: input, shape index: {}]   ;;  %s2970_s1 = inlined_call_operand.vmem [shape: f32[2,512], index: 1, kind: input, shape index: {}]   ;;  %s2971_s2 = inlined_call_operand.vmem [shape: bf16[4,512], index: 2, kind: input, shape index: {}]   ;;  %s2972_s3 = inlined_call_operand.hbm [shape: bf16[1408,256], index: 3, kind: input, shape index: {}]   ;;  %s2973_s4 = inlined_call_operand.hbm [shape: bf16[640,128], index: 4, kind: input, shape index: {}]   ;;  %s2974_s5 = inlined_call_operand.vmem [shape: f32[1,1664], index: 5, kind: input, shape index: {}]   ;;  %s2975_s6 = inlined_call_operand.hbm [shape: f32[2,128], index: 6, kind: output, shape index: {}]  }
   0x1   :  { %12 = vsyncpa [#allocation6], 0 }
   0x2   :  { %13 = vsyncpa [#allocation4], 0  ;;  %s2799_s21 = smov [#allocation2]   ;;  %s2727_s25 = scalar_lea.hbm %s2972_s3, 22528 }
   0x3   :  { %s25_s22 = sshll.u32 %s2799_s21, 4  ;;  %p2728_p0 = scmp.ne.s32.totalorder %s2972_s3, %s2727_s25  ;;  %s26_s22 = int_to_ptr.vmem [resolvable:$true] %s25_s22 }
   0x4   :  { %p2731_p1 = scmp.lt.u32.totalorder %s2727_s25, %s2972_s3 }
   0x6   :  { %p2733_p2 = pnand %p2731_p1, %p2728_p0 }
   0x8   :  { %2736 = shalt.err (!%p2733_p2)
}
   0x9   :  { %s2737_s30 = scalar_lea.vmem %s26_s22, 22528  ;;  %p2742_p4 = scmp.lt.s32.totalorder %s26_s22, %s26_s22 }
   0xa   :  { %p2738_p3 = scmp.ne.s32.totalorder %s26_s22, %s2737_s30  ;;  %p2743_p5 = scmp.lt.s32.totalorder %s2737_s30, %s2737_s30 }
   0xc   :  { %p2744_p6 = por %p2743_p5, %p2742_p4 }
   0xe   :  { %p2745_p7 = pnand %p2744_p6, %p2738_p3 }
  0x10   :  { %2748 = shalt.err (!%p2745_p7)
}
  0x11   :  { %s2800_s7 = smov 128   ;;  %s2801_s8 = smov 8  }
  0x12   :  { %31 = dma.hbm_to_vmem [thread:$0]  %s2972_s3, 22528, %s26_s22, [#allocation3], %s2800_s7, %s2800_s7, %s2801_s8  }
  0x13   :  { %s2802_s11 = smov [#allocation5]   ;;  %s2749_s15 = scalar_lea.hbm %s2973_s4, 5120 }
  0x14   :  { %s37_s12 = sshll.u32 %s2802_s11, 4  ;;  %p2750_p8 = scmp.ne.s32.totalorder %s2973_s4, %s2749_s15  ;;  %s38_s12 = int_to_ptr.vmem [resolvable:$true] %s37_s12 }
  0x15   :  { %p2753_p9 = scmp.lt.u32.totalorder %s2749_s15, %s2973_s4 }
  0x17   :  { %p2755_p10 = pnand %p2753_p9, %p2750_p8 }
  0x19   :  { %2758 = shalt.err (!%p2755_p10)
}
  0x1a   :  { %s2759_s20 = scalar_lea.vmem %s38_s12, 5120  ;;  %p2764_p12 = scmp.lt.s32.totalorder %s38_s12, %s38_s12 }
  0x1b   :  { %p2760_p11 = scmp.ne.s32.totalorder %s38_s12, %s2759_s20  ;;  %p2765_p13 = scmp.lt.s32.totalorder %s2759_s20, %s2759_s20 }
  0x1d   :  { %p2766_p0 = por %p2765_p13, %p2764_p12 }
  0x1f   :  { %p2767_p1 = pnand %p2766_p0, %p2760_p11 }
  0x21   :  { %2770 = shalt.err (!%p2767_p1)
}
  0x22   :  { %s2803_s3 = smov 64   ;;  %s2804_s21 = smov 4  }
  0x23   :  { %43 = dma.hbm_to_vmem [thread:$0]  %s2973_s4, 5120, %s38_s12, [#allocation6], %s2803_s3, %s2803_s3, %s2804_s21  }
  0x24   :  { %2793 = dma.done.wait [#allocation3], 22528  }
  0x25   :  { %2794 = vsyncadd [#allocation3], 4294944768 }
  0x26   :  { %2795 = dma.done.wait [#allocation6], 5120  }
  0x27   :  { %2796 = vsyncadd [#allocation6], 4294962176  ;;  %vm61_vm0 = vcmask 1043456   ;;  %v53_v0 = vld [vmem:[%s2969_s0] sm:$0xff]  ;;  %v54_v1 = vld [vmem:[%s2969_s0 + $0x8] sm:$0xff]  ;;  %v77_v10 = vlaneseq  ;;  %vm136_vm1 = vcmask 1041408  }
  0x28   :  { %v57_v2 = vcombine.high %v53_v0, %v53_v0  ;;  %v62_v3 = vsel %vm61_vm0, %v53_v0, 0.0  ;;  %v58_v4 = vcombine.high %v54_v1, %v54_v1  ;;  %v67_v6 = vsel %vm61_vm0, %v54_v1, 0.0  ;;  %v72_v15 = vld [vmem:[%s2971_s2] sm:$0xff]  ;;  %v2427_v43 = vld [vmem:[#allocation2 + $0x214] ss:$8 sps:$4 sm:$0xff]   ;;  %s2809_s18 = smov [#allocation7]  }
  0x29   :  { %v2875_v11 = vshrl.u32 %v77_v10, 7  ;;  %v2805_v12 = vmov 1983009808   ;;  %v115_v16 = vcombine.high %v72_v15, %v72_v15  ;;  %v2424_v24 = vld [vmem:[#allocation2 + $0x204] ss:$8 sps:$4 sm:$0xff]   ;;  %v2806_v25 = vmov 0  }
  0x2a   :  { %v63_v5 = vsel %vm61_vm0, %v57_v2, 0.0  ;;  %v68_v7 = vsel %vm61_vm0, %v58_v4, 0.0  ;;  %v117_v13 = vunpack.c.l.s4 %v2805_v12  ;;  %181 = vmatprep.mubr.bf16.mxu0 %v2806_v25  ;;  %222 = vmatprep.mubr.bf16.mxu1 %v2806_v25  ;;  %v2890_v27 = vld [vmem:[%s2970_s1] sm:$0xff]  ;;  %v102_v28 = vand.u32 127, %v77_v10  ;;  %v2425_v46 = vld [vmem:[#allocation2 + $0x210] ss:$8 sps:$4 sm:$0xff]  }
  0x2b   :  { %v64_v8 = vadd.f32 %v63_v5, %v62_v3  ;;  %v69_v9 = vadd.f32 %v68_v7, %v67_v6  ;;  %vm111_vm2 = vcmask 1041409   ;;  %v2422_v40 = vld [vmem:[#allocation2 + $0x200] ss:$8 sps:$4 sm:$0xff]   ;;  %vm132_vm3 = vcmask 31744   ;;  %v2521_v45 = vld [vmem:[#allocation2 + $0x4] ss:$8 sps:$4 sm:$0xff]  }
  0x2c   :  { %v118_v14 = vunpack.c.0.s8 %v117_v13  ;;  %v105_v32 = vsub.s32 %v102_v28, %v2875_v11  ;;  %v2519_v44 = vld [vmem:[#allocation2] ss:$8 sps:$4 sm:$0xff]   ;;  %v2524_v47 = vld [vmem:[#allocation2 + $0x14] ss:$8 sps:$4 sm:$0xff]   ;;  %v2430_v48 = vld [vmem:[#allocation2 + $0x224] ss:$8 sps:$4 sm:$0xff]  }
  0x2d   :  { %65 = vadd.xlane.f32.xlu0 %v64_v8  ;;  %v2522_v49 = vld [vmem:[#allocation2 + $0x10] ss:$8 sps:$4 sm:$0xff]   ;;  %v2527_v50 = vld [vmem:[#allocation2 + $0x24] ss:$8 sps:$4 sm:$0xff]   ;;  %v2428_v51 = vld [vmem:[#allocation2 + $0x220] ss:$8 sps:$4 sm:$0xff]  }
  0x2e   :  { %v2881_v17 = vsub.s32 %v118_v14, %v2875_v11  ;;  %v2433_v52 = vld [vmem:[#allocation2 + $0x234] ss:$8 sps:$4 sm:$0xff]   ;;  %v2525_v53 = vld [vmem:[#allocation2 + $0x20] ss:$8 sps:$4 sm:$0xff]   ;;  %v2431_v55 = vld [vmem:[#allocation2 + $0x230] ss:$8 sps:$4 sm:$0xff]  }
  0x2f   :  { %v2530_v54 = vld [vmem:[#allocation2 + $0x34] ss:$8 sps:$4 sm:$0xff]   ;;  %v2436_v56 = vld [vmem:[#allocation2 + $0x244] ss:$8 sps:$4 sm:$0xff]   ;;  %v2528_v57 = vld [vmem:[#allocation2 + $0x30] ss:$8 sps:$4 sm:$0xff]  }
  0x30   :  { %v129_v18 = vrot.slane %v115_v16, %v2881_v17  ;;  %v122_v19 = vrot.slane %v72_v15, %v2881_v17  ;;  %v2894_v30 = vrot.slane %v2890_v27, %v2881_v17  ;;  %v2533_v58 = vld [vmem:[#allocation2 + $0x44] ss:$8 sps:$4 sm:$0xff]   ;;  %v2434_v59 = vld [vmem:[#allocation2 + $0x240] ss:$8 sps:$4 sm:$0xff]   ;;  %v2439_v60 = vld [vmem:[#allocation2 + $0x254] ss:$8 sps:$4 sm:$0xff]  }
  0x31   :  { %70 = vadd.xlane.f32.xlu0 %v69_v9  ;;  %v2531_v61 = vld [vmem:[#allocation2 + $0x40] ss:$8 sps:$4 sm:$0xff]   ;;  %v2536_v62 = vld [vmem:[#allocation2 + $0x54] ss:$8 sps:$4 sm:$0xff]   ;;  %v2437_v63 = vld [vmem:[#allocation2 + $0x250] ss:$8 sps:$4 sm:$0xff]  }
  0x32   :  { %v131_v20 = vcombine.high %v129_v18, %v129_v18  ;;  %v130_v21 = vcombine.high %v122_v19, %v122_v19  ;;  %v144_v22 = vsel %vm136_vm1, %v129_v18, 0  ;;  %v138_v23 = vsel %vm136_vm1, %v122_v19, 0  ;;  %v2442_v0 = vld [vmem:[#allocation2 + $0x264] ss:$8 sps:$4 sm:$0xff]   ;;  %v2534_v1 = vld [vmem:[#allocation2 + $0x50] ss:$8 sps:$4 sm:$0xff]  }
  0x33   :  { %v800_v36 = vcombine.high %v2894_v30, %v2894_v30  ;;  %v2539_v2 = vld [vmem:[#allocation2 + $0x64] ss:$8 sps:$4 sm:$0xff]   ;;  %v2440_v3 = vld [vmem:[#allocation2 + $0x260] ss:$8 sps:$4 sm:$0xff]   ;;  %v2445_v4 = vld [vmem:[#allocation2 + $0x274] ss:$8 sps:$4 sm:$0xff]  }
  0x34   :  { %2102 = vmatprep.subr.msk.bf16.mxu1 %vm136_vm1, %v131_v20  ;;  %2100 = vmatprep.subr.msk.bf16.mxu0 %vm136_vm1, %v130_v21  ;;  %v2537_v5 = vld [vmem:[#allocation2 + $0x60] ss:$8 sps:$4 sm:$0xff]   ;;  %v2542_v6 = vld [vmem:[#allocation2 + $0x74] ss:$8 sps:$4 sm:$0xff]   ;;  %v2443_v7 = vld [vmem:[#allocation2 + $0x270] ss:$8 sps:$4 sm:$0xff]  }
  0x35   :  { %191 = vmatpush1.bf16.msra.mxu1 %v144_v22  ;;  %150 = vmatpush1.bf16.msra.mxu0 %v138_v23  ;;  %v807_v41 = vpack.c.bf16 %v800_v36, %v800_v36  ;;  %v2448_v8 = vld [vmem:[#allocation2 + $0x284] ss:$8 sps:$4 sm:$0xff]   ;;  %v2540_v9 = vld [vmem:[#allocation2 + $0x70] ss:$8 sps:$4 sm:$0xff]   ;;  %v2446_v12 = vld [vmem:[#allocation2 + $0x280] ss:$8 sps:$4 sm:$0xff]  }
  0x36   :  { %1142 = vmatprep.subr.bf16.mxu1 %v2424_v24  ;;  %635 = vmatprep.subr.bf16.mxu0 %v2521_v45  ;;  %v2545_v10 = vld [vmem:[#allocation2 + $0x84] ss:$8 sps:$4 sm:$0xff]   ;;  %v2451_v13 = vld [vmem:[#allocation2 + $0x294] ss:$8 sps:$4 sm:$0xff]   ;;  %v2543_v14 = vld [vmem:[#allocation2 + $0x80] ss:$8 sps:$4 sm:$0xff]   ;;  %v806_v45 = vpack.c.bf16 %v2894_v30, %v2894_v30 }
  0x37   :  { %v2548_v15 = vld [vmem:[#allocation2 + $0x94] ss:$8 sps:$4 sm:$0xff]   ;;  %v2449_v16 = vld [vmem:[#allocation2 + $0x290] ss:$8 sps:$4 sm:$0xff]   ;;  %v2454_v18 = vld [vmem:[#allocation2 + $0x2a4] ss:$8 sps:$4 sm:$0xff]  }
  0x38   :  { %v2546_v19 = vld [vmem:[#allocation2 + $0x90] ss:$8 sps:$4 sm:$0xff]   ;;  %v2551_v20 = vld [vmem:[#allocation2 + $0xa4] ss:$8 sps:$4 sm:$0xff]   ;;  %v2452_v21 = vld [vmem:[#allocation2 + $0x2a0] ss:$8 sps:$4 sm:$0xff]  }
  0x39   :  { %v2457_v22 = vld [vmem:[#allocation2 + $0x2b4] ss:$8 sps:$4 sm:$0xff]   ;;  %v2549_v23 = vld [vmem:[#allocation2 + $0xa0] ss:$8 sps:$4 sm:$0xff]   ;;  %v2460_v28 = vld [vmem:[#allocation2 + $0x2c4] ss:$8 sps:$4 sm:$0xff]  }
  0x3a   :  { %v2554_v24 = vld [vmem:[#allocation2 + $0xb4] ss:$8 sps:$4 sm:$0xff]   ;;  %v2461_v36 = vld [vmem:[#allocation2 + $0x2d0] ss:$8 sps:$4 sm:$0xff]   ;;  %v2482_v30 = vld [vmem:[#allocation2 + $0x340] ss:$8 sps:$4 sm:$0xff]  }
  0x3b   :  { %vm2808_vm4 = vmmov 0   ;;  %s2090_s19 = sshll.u32 %s2809_s18, 4  ;;  %s2091_s19 = int_to_ptr.vmem [resolvable:$true] %s2090_s19 }
  0x3c   :  { %s2771_s20 = scalar_lea.vmem %s2091_s19, 32  ;;  %p2776_p3 = scmp.lt.s32.totalorder %s2091_s19, %s2091_s19 }
  0x3d   :  { %p2772_p2 = scmp.ne.s32.totalorder %s2091_s19, %s2771_s20  ;;  %p2777_p4 = scmp.lt.s32.totalorder %s2771_s20, %s2771_s20 }
  0x3f   :  { %p2778_p5 = por %p2777_p4, %p2776_p3 }
  0x41   :  { %p2779_p6 = pnand %p2778_p5, %p2772_p2 }
  0xba   :  { %v66_v26 = vpop.xlane.xlu0 %65 }
  0xbb   :  { %v73_v29 = vpack.c.bf16 %v66_v26, %v66_v26  ;;  %v2455_v26 = vld [vmem:[#allocation2 + $0x2b0] ss:$8 sps:$4 sm:$0xff]  }
  0xbd   :  { %v99_v33 = vunpack.c.l.b16 %v73_v29  ;;  %v2552_v29 = vld [vmem:[#allocation2 + $0xb0] ss:$8 sps:$4 sm:$0xff]  }
  0xbe   :  { %v71_v31 = vpop.xlane.xlu0 %70 }
  0xbf   :  { %v74_v34 = vpack.c.bf16 %v71_v31, %v71_v31  ;;  %v106_v37 = vrot.slane %v99_v33, %v105_v32  ;;  %v2557_v31 = vld [vmem:[#allocation2 + $0xc4] ss:$8 sps:$4 sm:$0xff]   ;;  %v2463_v33 = vld [vmem:[#allocation2 + $0x2d4] ss:$8 sps:$4 sm:$0xff]  }
  0xc1   :  { %v100_v35 = vunpack.c.l.b16 %v74_v34  ;;  %v2555_v34 = vld [vmem:[#allocation2 + $0xc0] ss:$8 sps:$4 sm:$0xff]  }
  0xc3   :  { %v110_v38 = vrot.slane %v100_v35, %v105_v32  ;;  %v2458_v32 = vld [vmem:[#allocation2 + $0x2c0] ss:$8 sps:$4 sm:$0xff]   ;;  %v2560_v35 = vld [vmem:[#allocation2 + $0xd4] ss:$8 sps:$4 sm:$0xff]  }
  0xc5   :  { %v112_v39 = vsel %vm111_vm2, %v110_v38, %v106_v37  ;;  %v785_v37 = vcombine.high %v2890_v27, %v2890_v27  ;;  %v2466_v38 = vld [vmem:[#allocation2 + $0x2e4] ss:$8 sps:$4 sm:$0xff]  }
  0xc6   :  { %v113_v42 = vpack.c.b16 %v112_v39, %v112_v39  ;;  %v2558_v39 = vld [vmem:[#allocation2 + $0xd0] ss:$8 sps:$4 sm:$0xff]   ;;  %v2472_v27 = vld [vmem:[#allocation2 + $0x304] ss:$8 sps:$4 sm:$0xff]  }
  0xc8   :  { %2101 = vmatmul.mubr.msk.bf16.vlgmr.msra.gmra.mrb[0].mxu0 %vm132_vm3, %v113_v42  ;;  %2103 = vmatmul.mubr.msk.bf16.vlgmr.msra.gmra.mrb[0].mxu1 %vm132_vm3, %v113_v42  ;;  %v2469_v42 = vld [vmem:[#allocation2 + $0x2f4] ss:$8 sps:$4 sm:$0xff]  }
  0xc9   :  { %1143 = vmatpush1.bf16.msra.mxu1 %v2422_v40  ;;  %1174 = vmatprep.mubr.bf16.mxu1 %v807_v41  ;;  %v2464_v40 = vld [vmem:[#allocation2 + $0x2e0] ss:$8 sps:$4 sm:$0xff]   ;;  %v2902_v41 = vrot.slane %v785_v37, %v2881_v17  ;;  %v2473_v17 = vld [vmem:[#allocation2 + $0x310] ss:$8 sps:$4 sm:$0xff]  }
  0xca   :  { %1144 = vmatprep.subr.bf16.mxu1 %v2427_v43  ;;  %636 = vmatpush1.bf16.msra.mxu0 %v2519_v44  ;;  %v2467_v43 = vld [vmem:[#allocation2 + $0x2f0] ss:$8 sps:$4 sm:$0xff]  }
  0xcb   :  { %637 = vmatprep.subr.bf16.mxu0 %v2524_v47  ;;  %v801_v44 = vcombine.high %v2902_v41, %v2902_v41 }
  0xcd   :  { %1145 = vmatpush1.bf16.msra.mxu1 %v2425_v46  ;;  %v2470_v46 = vld [vmem:[#allocation2 + $0x300] ss:$8 sps:$4 sm:$0xff]   ;;  %v809_v47 = vpack.c.bf16 %v801_v44, %v801_v44 }
  0xce   :  { %1146 = vmatprep.subr.bf16.mxu1 %v2430_v48  ;;  %638 = vmatpush1.bf16.msra.mxu0 %v2522_v49  ;;  %v2475_v48 = vld [vmem:[#allocation2 + $0x314] ss:$8 sps:$4 sm:$0xff]   ;;  %v2478_v49 = vld [vmem:[#allocation2 + $0x324] ss:$8 sps:$4 sm:$0xff]   ;;  %v2567_v44 = vld [vmem:[#allocation2 + $0x100] ss:$8 sps:$4 sm:$0xff]  }
  0xcf   :  { %639 = vmatprep.subr.bf16.mxu0 %v2527_v50  ;;  %v2476_v50 = vld [vmem:[#allocation2 + $0x320] ss:$8 sps:$4 sm:$0xff]  }
  0xd1   :  { %1147 = vmatpush1.bf16.msra.mxu1 %v2428_v51  ;;  %v2481_v51 = vld [vmem:[#allocation2 + $0x334] ss:$8 sps:$4 sm:$0xff]  }
  0xd2   :  { %1148 = vmatprep.subr.bf16.mxu1 %v2433_v52  ;;  %640 = vmatpush1.bf16.msra.mxu0 %v2525_v53  ;;  %v2479_v52 = vld [vmem:[#allocation2 + $0x330] ss:$8 sps:$4 sm:$0xff]   ;;  %v2484_v53 = vld [vmem:[#allocation2 + $0x344] ss:$8 sps:$4 sm:$0xff]  }
  0xd3   :  { %641 = vmatprep.subr.bf16.mxu0 %v2530_v54  ;;  %v2487_v54 = vld [vmem:[#allocation2 + $0x354] ss:$8 sps:$4 sm:$0xff]  }
  0xd5   :  { %1149 = vmatpush1.bf16.msra.mxu1 %v2431_v55  ;;  %v2485_v55 = vld [vmem:[#allocation2 + $0x350] ss:$8 sps:$4 sm:$0xff]  }
  0xd6   :  { %1150 = vmatprep.subr.bf16.mxu1 %v2436_v56  ;;  %642 = vmatpush1.bf16.msra.mxu0 %v2528_v57  ;;  %v2490_v56 = vld [vmem:[#allocation2 + $0x364] ss:$8 sps:$4 sm:$0xff]  }
  0xd7   :  { %643 = vmatprep.subr.bf16.mxu0 %v2533_v58  ;;  %v2563_v57 = vld [vmem:[#allocation2 + $0xe4] ss:$8 sps:$4 sm:$0xff]   ;;  %v2561_v58 = vld [vmem:[#allocation2 + $0xe0] ss:$8 sps:$4 sm:$0xff]  }
  0xd9   :  { %1151 = vmatpush1.bf16.msra.mxu1 %v2434_v59  ;;  %v2488_v59 = vld [vmem:[#allocation2 + $0x360] ss:$8 sps:$4 sm:$0xff]  }
  0xda   :  { %1152 = vmatprep.subr.bf16.mxu1 %v2439_v60  ;;  %644 = vmatpush1.bf16.msra.mxu0 %v2531_v61  ;;  %v2493_v60 = vld [vmem:[#allocation2 + $0x374] ss:$8 sps:$4 sm:$0xff]  }
  0xdb   :  { %645 = vmatprep.subr.bf16.mxu0 %v2536_v62  ;;  %v2566_v61 = vld [vmem:[#allocation2 + $0xf4] ss:$8 sps:$4 sm:$0xff]   ;;  %v2564_v62 = vld [vmem:[#allocation2 + $0xf0] ss:$8 sps:$4 sm:$0xff]  }
  0xdd   :  { %1153 = vmatpush1.bf16.msra.mxu1 %v2437_v63  ;;  %v2491_v63 = vld [vmem:[#allocation2 + $0x370] ss:$8 sps:$4 sm:$0xff]  }
  0xde   :  { %1154 = vmatprep.subr.bf16.mxu1 %v2442_v0  ;;  %646 = vmatpush1.bf16.msra.mxu0 %v2534_v1  ;;  %v2496_v0 = vld [vmem:[#allocation2 + $0x384] ss:$8 sps:$4 sm:$0xff]  }
  0xdf   :  { %647 = vmatprep.subr.bf16.mxu0 %v2539_v2  ;;  %v2569_v1 = vld [vmem:[#allocation2 + $0x104] ss:$8 sps:$4 sm:$0xff]   ;;  %v2494_v2 = vld [vmem:[#allocation2 + $0x380] ss:$8 sps:$4 sm:$0xff]  }
  0xe1   :  { %1155 = vmatpush1.bf16.msra.mxu1 %v2440_v3  ;;  %v2499_v3 = vld [vmem:[#allocation2 + $0x394] ss:$8 sps:$4 sm:$0xff]  }
  0xe2   :  { %1156 = vmatprep.subr.bf16.mxu1 %v2445_v4  ;;  %648 = vmatpush1.bf16.msra.mxu0 %v2537_v5  ;;  %v2497_v4 = vld [vmem:[#allocation2 + $0x390] ss:$8 sps:$4 sm:$0xff]   ;;  %v2502_v5 = vld [vmem:[#allocation2 + $0x3a4] ss:$8 sps:$4 sm:$0xff]  }
  0xe3   :  { %649 = vmatprep.subr.bf16.mxu0 %v2542_v6  ;;  %v2500_v6 = vld [vmem:[#allocation2 + $0x3a0] ss:$8 sps:$4 sm:$0xff]  }
  0xe5   :  { %1157 = vmatpush1.bf16.msra.mxu1 %v2443_v7  ;;  %v2505_v7 = vld [vmem:[#allocation2 + $0x3b4] ss:$8 sps:$4 sm:$0xff]  }
  0xe6   :  { %1158 = vmatprep.subr.bf16.mxu1 %v2448_v8  ;;  %650 = vmatpush1.bf16.msra.mxu0 %v2540_v9  ;;  %v2503_v8 = vld [vmem:[#allocation2 + $0x3b0] ss:$8 sps:$4 sm:$0xff]   ;;  %v2508_v9 = vld [vmem:[#allocation2 + $0x3c4] ss:$8 sps:$4 sm:$0xff]  }
  0xe7   :  { %651 = vmatprep.subr.bf16.mxu0 %v2545_v10  ;;  %v2506_v10 = vld [vmem:[#allocation2 + $0x3c0] ss:$8 sps:$4 sm:$0xff]  }
  0xe9   :  { %1159 = vmatpush1.bf16.msra.mxu1 %v2446_v12  ;;  %v2511_v12 = vld [vmem:[#allocation2 + $0x3d4] ss:$8 sps:$4 sm:$0xff]  }
  0xea   :  { %1160 = vmatprep.subr.bf16.mxu1 %v2451_v13  ;;  %652 = vmatpush1.bf16.msra.mxu0 %v2543_v14  ;;  %v2509_v13 = vld [vmem:[#allocation2 + $0x3d0] ss:$8 sps:$4 sm:$0xff]   ;;  %v2514_v14 = vld [vmem:[#allocation2 + $0x3e4] ss:$8 sps:$4 sm:$0xff]  }
  0xeb   :  { %653 = vmatprep.subr.bf16.mxu0 %v2548_v15  ;;  %v2512_v15 = vld [vmem:[#allocation2 + $0x3e0] ss:$8 sps:$4 sm:$0xff]  }
  0xed   :  { %1161 = vmatpush1.bf16.msra.mxu1 %v2449_v16  ;;  %v2517_v16 = vld [vmem:[#allocation2 + $0x3f4] ss:$8 sps:$4 sm:$0xff]  }
  0xee   :  { %1162 = vmatprep.subr.bf16.mxu1 %v2454_v18  ;;  %654 = vmatpush1.bf16.msra.mxu0 %v2546_v19  ;;  %v2515_v18 = vld [vmem:[#allocation2 + $0x3f0] ss:$8 sps:$4 sm:$0xff]   ;;  %v808_v19 = vpack.c.bf16 %v2902_v41, %v2902_v41 }
  0xef   :  { %655 = vmatprep.subr.bf16.mxu0 %v2551_v20  ;;  %v2912_v20 = vsub.s32 0, %v2875_v11 }
  0xf1   :  { %1163 = vmatpush1.bf16.msra.mxu1 %v2452_v21  ;;  %v2917_v21 = vld [vmem:[%s2974_s5] sm:$0xf] }
  0xf2   :  { %1164 = vmatprep.subr.bf16.mxu1 %v2457_v22  ;;  %656 = vmatpush1.bf16.msra.mxu0 %v2549_v23  ;;  %v2920_v22 = vsub.s32 1, %v2875_v11  ;;  %v91_v23 = vsub.s32 3, %v2875_v11 }
  0xf3   :  { %657 = vmatprep.subr.bf16.mxu0 %v2554_v24  ;;  %v80_v24 = vrot.slane %v2917_v21, %v2912_v20 }
  0xf5   :  { %1165 = vmatpush1.bf16.msra.mxu1 %v2455_v26  ;;  %v84_v26 = vrot.slane %v2917_v21, %v2920_v22 }
  0xf6   :  { %1166 = vmatprep.subr.bf16.mxu1 %v2460_v28  ;;  %658 = vmatpush1.bf16.msra.mxu0 %v2552_v29 }
  0xf7   :  { %659 = vmatprep.subr.bf16.mxu0 %v2557_v31 }
  0xf9   :  { %1167 = vmatpush1.bf16.msra.mxu1 %v2458_v32 }
  0xfa   :  { %1168 = vmatprep.subr.bf16.mxu1 %v2463_v33  ;;  %660 = vmatpush1.bf16.msra.mxu0 %v2555_v34 }
  0xfb   :  { %661 = vmatprep.subr.bf16.mxu0 %v2560_v35 }
  0xfd   :  { %1169 = vmatpush1.bf16.msra.mxu1 %v2461_v36 }
  0xfe   :  { %1170 = vmatprep.subr.bf16.mxu1 %v2466_v38  ;;  %662 = vmatpush1.bf16.msra.mxu0 %v2558_v39 }
  0xff   :  { %663 = vmatprep.subr.bf16.mxu0 %v2563_v57  ;;  %v2588_v57 = vld [vmem:[#allocation2 + $0x170] ss:$8 sps:$4 sm:$0xff]  }
 0x101   :  { %1171 = vmatpush1.bf16.msra.mxu1 %v2464_v40 }
 0x102   :  { %1172 = vmatprep.subr.bf16.mxu1 %v2469_v42  ;;  %664 = vmatpush1.bf16.msra.mxu0 %v2561_v58  ;;  %v2593_v58 = vld [vmem:[#allocation2 + $0x184] ss:$8 sps:$4 sm:$0xff]  }
 0x103   :  { %665 = vmatprep.subr.bf16.mxu0 %v2566_v61  ;;  %v2594_v61 = vld [vmem:[#allocation2 + $0x190] ss:$8 sps:$4 sm:$0xff]  }
 0x105   :  { %1173 = vmatpush1.bf16.msra.mxu1 %v2467_v43 }
 0x106   :  { %1183 = vmatprep.subr.bf16.mxu1 %v2472_v27  ;;  %666 = vmatpush1.bf16.msra.mxu0 %v2564_v62  ;;  %v2599_v62 = vld [vmem:[#allocation2 + $0x1a4] ss:$8 sps:$4 sm:$0xff]  }
 0x107   :  { %676 = vmatprep.subr.bf16.mxu0 %v2569_v1  ;;  %v2600_v1 = vld [vmem:[#allocation2 + $0x1b0] ss:$8 sps:$4 sm:$0xff]  }
 0x108   :  { %1175 = vmatmul.mubr.bf16.vlgmr.msra.gmra.mrb[4].mxu1 %v806_v45  ;;  %v2572_v45 = vld [vmem:[#allocation2 + $0x114] ss:$8 sps:$4 sm:$0xff]  }
 0x109   :  { %1184 = vmatpush1.bf16.msra.mxu1 %v2470_v46  ;;  %1215 = vmatprep.mubr.bf16.mxu1 %v809_v47  ;;  %v2570_v47 = vld [vmem:[#allocation2 + $0x110] ss:$8 sps:$4 sm:$0xff]  }
 0x10a   :  { %1185 = vmatprep.subr.bf16.mxu1 %v2475_v48  ;;  %v2575_v48 = vld [vmem:[#allocation2 + $0x124] ss:$8 sps:$4 sm:$0xff]  }
 0x10d   :  { %1186 = vmatpush1.bf16.msra.mxu1 %v2473_v17  ;;  %v2573_v17 = vld [vmem:[#allocation2 + $0x120] ss:$8 sps:$4 sm:$0xff]  }
 0x10e   :  { %1187 = vmatprep.subr.bf16.mxu1 %v2478_v49  ;;  %v2578_v49 = vld [vmem:[#allocation2 + $0x134] ss:$8 sps:$4 sm:$0xff]  }
 0x111   :  { %1188 = vmatpush1.bf16.msra.mxu1 %v2476_v50  ;;  %v2576_v50 = vld [vmem:[#allocation2 + $0x130] ss:$8 sps:$4 sm:$0xff]  }
 0x112   :  { %1189 = vmatprep.subr.bf16.mxu1 %v2481_v51  ;;  %v2581_v51 = vld [vmem:[#allocation2 + $0x144] ss:$8 sps:$4 sm:$0xff]  }
 0x115   :  { %1190 = vmatpush1.bf16.msra.mxu1 %v2479_v52  ;;  %v2579_v52 = vld [vmem:[#allocation2 + $0x140] ss:$8 sps:$4 sm:$0xff]  }
 0x116   :  { %1191 = vmatprep.subr.bf16.mxu1 %v2484_v53  ;;  %v2584_v53 = vld [vmem:[#allocation2 + $0x154] ss:$8 sps:$4 sm:$0xff]  }
 0x119   :  { %1192 = vmatpush1.bf16.msra.mxu1 %v2482_v30  ;;  %v2582_v30 = vld [vmem:[#allocation2 + $0x150] ss:$8 sps:$4 sm:$0xff]  }
 0x11a   :  { %1193 = vmatprep.subr.bf16.mxu1 %v2487_v54  ;;  %v2587_v54 = vld [vmem:[#allocation2 + $0x164] ss:$8 sps:$4 sm:$0xff]  }
 0x11d   :  { %1194 = vmatpush1.bf16.msra.mxu1 %v2485_v55  ;;  %v2585_v55 = vld [vmem:[#allocation2 + $0x160] ss:$8 sps:$4 sm:$0xff]  }
 0x11e   :  { %1195 = vmatprep.subr.bf16.mxu1 %v2490_v56  ;;  %v2590_v56 = vld [vmem:[#allocation2 + $0x174] ss:$8 sps:$4 sm:$0xff]  }
 0x121   :  { %1196 = vmatpush1.bf16.msra.mxu1 %v2488_v59  ;;  %v2591_v59 = vld [vmem:[#allocation2 + $0x180] ss:$8 sps:$4 sm:$0xff]  }
 0x122   :  { %1197 = vmatprep.subr.bf16.mxu1 %v2493_v60  ;;  %v2596_v60 = vld [vmem:[#allocation2 + $0x194] ss:$8 sps:$4 sm:$0xff]  }
 0x125   :  { %1198 = vmatpush1.bf16.msra.mxu1 %v2491_v63  ;;  %v2597_v63 = vld [vmem:[#allocation2 + $0x1a0] ss:$8 sps:$4 sm:$0xff]  }
 0x126   :  { %1199 = vmatprep.subr.bf16.mxu1 %v2496_v0  ;;  %v2602_v0 = vld [vmem:[#allocation2 + $0x1b4] ss:$8 sps:$4 sm:$0xff]  }
 0x129   :  { %1200 = vmatpush1.bf16.msra.mxu1 %v2494_v2  ;;  %v2605_v2 = vld [vmem:[#allocation2 + $0x1c4] ss:$8 sps:$4 sm:$0xff]  }
 0x12a   :  { %1201 = vmatprep.subr.bf16.mxu1 %v2499_v3  ;;  %v2603_v3 = vld [vmem:[#allocation2 + $0x1c0] ss:$8 sps:$4 sm:$0xff]  }
 0x12d   :  { %1202 = vmatpush1.bf16.msra.mxu1 %v2497_v4  ;;  %v87_v4 = vsub.s32 2, %v2875_v11  ;;  %v2616_v11 = vld [vmem:[#allocation5] sm:$0xff]  }
 0x12e   :  { %1203 = vmatprep.subr.bf16.mxu1 %v2502_v5  ;;  %v2608_v5 = vld [vmem:[#allocation2 + $0x1d4] ss:$8 sps:$4 sm:$0xff]  }
 0x131   :  { %1204 = vmatpush1.bf16.msra.mxu1 %v2500_v6  ;;  %v2606_v6 = vld [vmem:[#allocation2 + $0x1d0] ss:$8 sps:$4 sm:$0xff]  }
 0x132   :  { %1205 = vmatprep.subr.bf16.mxu1 %v2505_v7  ;;  %v88_v7 = vrot.slane %v2917_v21, %v87_v4  ;;  %v2682_v4 = vld [vmem:[#allocation2 + $0x510] ss:$8 sps:$4 sm:$0xff]  }
 0x135   :  { %1206 = vmatpush1.bf16.msra.mxu1 %v2503_v8  ;;  %v2611_v8 = vld [vmem:[#allocation2 + $0x1e4] ss:$8 sps:$4 sm:$0xff]  }
 0x136   :  { %1207 = vmatprep.subr.bf16.mxu1 %v2508_v9  ;;  %v2609_v9 = vld [vmem:[#allocation2 + $0x1e0] ss:$8 sps:$4 sm:$0xff]  }
 0x139   :  { %1208 = vmatpush1.bf16.msra.mxu1 %v2506_v10 }
 0x13a   :  { %1209 = vmatprep.subr.bf16.mxu1 %v2511_v12  ;;  %v2614_v12 = vld [vmem:[#allocation2 + $0x1f4] ss:$8 sps:$4 sm:$0xff]  }
 0x13d   :  { %1210 = vmatpush1.bf16.msra.mxu1 %v2509_v13  ;;  %v2612_v13 = vld [vmem:[#allocation2 + $0x1f0] ss:$8 sps:$4 sm:$0xff]  }
 0x13e   :  { %1211 = vmatprep.subr.bf16.mxu1 %v2514_v14 }
 0x141   :  { %1212 = vmatpush1.bf16.msra.mxu1 %v2512_v15  ;;  %v2615_v15 = vld [vmem:[#allocation5 + $0x40] sm:$0xff]  }
 0x142   :  { %1213 = vmatprep.subr.bf16.mxu1 %v2517_v16 }
 0x145   :  { %1214 = vmatpush1.bf16.msra.mxu1 %v2515_v18  ;;  %v2617_v18 = vld [vmem:[#allocation5 + $0x48] sm:$0xff]  }
 0x148   :  { %1216 = vmatmul.mubr.bf16.vlgmr.msra.gmra.mrb[4].mxu1 %v808_v19  ;;  %v2618_v19 = vld [vmem:[#allocation5 + $0x8] sm:$0xff]  }
 0x149   :  { %1567 = vmatprep.mubr.bf16.mxu1 %v2806_v25  ;;  %v92_v25 = vrot.slane %v2917_v21, %v91_v23  ;;  %v2619_v21 = vld [vmem:[#allocation5 + $0x50] sm:$0xff]  }
 0x14a   :  { %v2620_v23 = vld [vmem:[#allocation5 + $0x10] sm:$0xff]  }
 0x19b   :  { %v183_v28 = vpop.f32.mrb[0].mxu0  ;;  %v2928_v29 = vpop.f32.mrb[0].mxu1 }
 0x19c   :  { %v184_v31 = vadd.f32 %v183_v28, %v80_v24  ;;  %v185_v32 = vpop.f32.mrb[1].mxu0  ;;  %v226_v33 = vpop.f32.mrb[1].mxu1  ;;  %v225_v10 = vadd.f32 %v2928_v29, %v88_v7  ;;  %v2621_v24 = vld [vmem:[#allocation5 + $0x58] sm:$0xff]   ;;  %v2624_v28 = vld [vmem:[#allocation5 + $0x20] sm:$0xff]   ;;  %v2625_v29 = vld [vmem:[#allocation5 + $0x68] sm:$0xff]  }
 0x19d   :  { %v186_v34 = vadd.f32 %v185_v32, %v84_v26  ;;  %v227_v35 = vadd.f32 %v226_v33, %v92_v25  ;;  %v187_v36 = vpop.f32.mrb[2].mxu0  ;;  %v228_v37 = vpop.f32.mrb[2].mxu1  ;;  %v2622_v26 = vld [vmem:[#allocation5 + $0x18] sm:$0xff]   ;;  %v2623_v25 = vld [vmem:[#allocation5 + $0x60] sm:$0xff]   ;;  %v2627_v32 = vld [vmem:[#allocation5 + $0x70] sm:$0xff]  }
 0x19e   :  { %v231_v38 = vmax.f32 %v184_v31, 0.0  ;;  %v188_v39 = vpop.f32.mrb[3].mxu0  ;;  %v229_v40 = vpop.f32.mrb[3].mxu1  ;;  %v233_v14 = vmax.f32 %v225_v10, 0.0  ;;  %v2626_v31 = vld [vmem:[#allocation5 + $0x28] sm:$0xff]   ;;  %v2628_v33 = vld [vmem:[#allocation5 + $0x30] sm:$0xff]  }
 0x19f   :  { %v232_v41 = vmax.f32 %v186_v34, 0.0  ;;  %v234_v42 = vmax.f32 %v227_v35, 0.0  ;;  %v2629_v34 = vld [vmem:[#allocation5 + $0x78] sm:$0xff]   ;;  %v2633_v36 = vld [vmem:[#allocation2 + $0x404] ss:$8 sps:$4 sm:$0xff]  }
 0x1a0   :  { %v299_v27 = vpack.c.bf16 %v231_v38, %v231_v38  ;;  %v301_v16 = vpack.c.bf16 %v233_v14, %v233_v14  ;;  %v2630_v35 = vld [vmem:[#allocation5 + $0x38] sm:$0xff]   ;;  %v810_v37 = vld [vmem:[%s2974_s5 + $0x6] sm:$0x3]  ;;  %v2661_v10 = vld [vmem:[#allocation2 + $0x4a0] ss:$8 sps:$4 sm:$0xff]  }
 0x1a1   :  { %v300_v43 = vpack.c.bf16 %v232_v41, %v232_v41  ;;  %v302_v46 = vpack.c.bf16 %v234_v42, %v234_v42  ;;  %v815_v38 = vrot.slane %v810_v37, %v2912_v20  ;;  %v819_v39 = vrot.slane %v810_v37, %v2920_v22  ;;  %v2663_v7 = vld [vmem:[#allocation2 + $0x4a4] ss:$8 sps:$4 sm:$0xff]  }
 0x1a2   :  { %v2693_v14 = vld [vmem:[#allocation2 + $0x544] ss:$8 sps:$4 sm:$0xff]  }
 0x1a3   :  { %667 = vmatprep.mubr.bf16.mxu0 %v300_v43 }
 0x1a4   :  { %668 = vmatmul.mubr.bf16.vlgmr.msra.gmra.mrb[4].mxu0 %v299_v27 }
 0x1a5   :  { %677 = vmatpush1.bf16.msra.mxu0 %v2567_v44  ;;  %708 = vmatprep.mubr.bf16.mxu0 %v302_v46 }
 0x1a6   :  { %678 = vmatprep.subr.bf16.mxu0 %v2572_v45 }
 0x1a9   :  { %679 = vmatpush1.bf16.msra.mxu0 %v2570_v47 }
 0x1aa   :  { %680 = vmatprep.subr.bf16.mxu0 %v2575_v48  ;;  %v2631_v48 = vld [vmem:[#allocation2 + $0x400] ss:$8 sps:$4 sm:$0xff]  }
 0x1ad   :  { %681 = vmatpush1.bf16.msra.mxu0 %v2573_v17 }
 0x1ae   :  { %682 = vmatprep.subr.bf16.mxu0 %v2578_v49  ;;  %v2636_v49 = vld [vmem:[#allocation2 + $0x414] ss:$8 sps:$4 sm:$0xff]  }
 0x1b1   :  { %683 = vmatpush1.bf16.msra.mxu0 %v2576_v50  ;;  %v2634_v50 = vld [vmem:[#allocation2 + $0x410] ss:$8 sps:$4 sm:$0xff]  }
 0x1b2   :  { %684 = vmatprep.subr.bf16.mxu0 %v2581_v51  ;;  %v2639_v51 = vld [vmem:[#allocation2 + $0x424] ss:$8 sps:$4 sm:$0xff]  }
 0x1b5   :  { %685 = vmatpush1.bf16.msra.mxu0 %v2579_v52  ;;  %v2637_v52 = vld [vmem:[#allocation2 + $0x420] ss:$8 sps:$4 sm:$0xff]  }
 0x1b6   :  { %686 = vmatprep.subr.bf16.mxu0 %v2584_v53  ;;  %v2642_v53 = vld [vmem:[#allocation2 + $0x434] ss:$8 sps:$4 sm:$0xff]  }
 0x1b9   :  { %687 = vmatpush1.bf16.msra.mxu0 %v2582_v30  ;;  %v2640_v30 = vld [vmem:[#allocation2 + $0x430] ss:$8 sps:$4 sm:$0xff]  }
 0x1ba   :  { %688 = vmatprep.subr.bf16.mxu0 %v2587_v54  ;;  %v2645_v54 = vld [vmem:[#allocation2 + $0x444] ss:$8 sps:$4 sm:$0xff]  }
 0x1bd   :  { %689 = vmatpush1.bf16.msra.mxu0 %v2585_v55  ;;  %v2643_v55 = vld [vmem:[#allocation2 + $0x440] ss:$8 sps:$4 sm:$0xff]  }
 0x1be   :  { %690 = vmatprep.subr.bf16.mxu0 %v2590_v56  ;;  %v2648_v56 = vld [vmem:[#allocation2 + $0x454] ss:$8 sps:$4 sm:$0xff]  }
 0x1c1   :  { %691 = vmatpush1.bf16.msra.mxu0 %v2588_v57  ;;  %v2646_v57 = vld [vmem:[#allocation2 + $0x450] ss:$8 sps:$4 sm:$0xff]  }
 0x1c2   :  { %692 = vmatprep.subr.bf16.mxu0 %v2593_v58  ;;  %v2651_v58 = vld [vmem:[#allocation2 + $0x464] ss:$8 sps:$4 sm:$0xff]  }
 0x1c5   :  { %693 = vmatpush1.bf16.msra.mxu0 %v2591_v59  ;;  %v2649_v59 = vld [vmem:[#allocation2 + $0x460] ss:$8 sps:$4 sm:$0xff]  }
 0x1c6   :  { %694 = vmatprep.subr.bf16.mxu0 %v2596_v60  ;;  %v2654_v60 = vld [vmem:[#allocation2 + $0x474] ss:$8 sps:$4 sm:$0xff]  }
 0x1c9   :  { %695 = vmatpush1.bf16.msra.mxu0 %v2594_v61  ;;  %v2652_v61 = vld [vmem:[#allocation2 + $0x470] ss:$8 sps:$4 sm:$0xff]  }
 0x1ca   :  { %696 = vmatprep.subr.bf16.mxu0 %v2599_v62  ;;  %v2657_v62 = vld [vmem:[#allocation2 + $0x484] ss:$8 sps:$4 sm:$0xff]  }
 0x1cd   :  { %697 = vmatpush1.bf16.msra.mxu0 %v2597_v63  ;;  %v2679_v63 = vld [vmem:[#allocation2 + $0x500] ss:$8 sps:$4 sm:$0xff]  }
 0x1ce   :  { %698 = vmatprep.subr.bf16.mxu0 %v2602_v0  ;;  %v2681_v0 = vld [vmem:[#allocation2 + $0x504] ss:$8 sps:$4 sm:$0xff]  }
 0x1cf   :  { %1535 = vmatprep.subr.bf16.mxu1 %v2681_v0  ;;  %v2713_v0 = vld [vmem:[#allocation5 + $0xe8] sm:$0xff]  }
 0x1d0   :  { %1536 = vmatpush1.bf16.msra.mxu1 %v2679_v63  ;;  %v2712_v63 = vld [vmem:[#allocation5 + $0xa0] sm:$0xff]  }
 0x1d1   :  { %699 = vmatpush1.bf16.msra.mxu0 %v2600_v1  ;;  %v2655_v1 = vld [vmem:[#allocation2 + $0x480] ss:$8 sps:$4 sm:$0xff]  }
 0x1d2   :  { %700 = vmatprep.subr.bf16.mxu0 %v2605_v2  ;;  %v2684_v2 = vld [vmem:[#allocation2 + $0x514] ss:$8 sps:$4 sm:$0xff]  }
 0x1d3   :  { %1537 = vmatprep.subr.bf16.mxu1 %v2684_v2  ;;  %v2715_v2 = vld [vmem:[#allocation5 + $0xf0] sm:$0xff]  }
 0x1d4   :  { %1538 = vmatpush1.bf16.msra.mxu1 %v2682_v4  ;;  %v2717_v4 = vld [vmem:[#allocation5 + $0xf8] sm:$0xff]  }
 0x1d5   :  { %701 = vmatpush1.bf16.msra.mxu0 %v2603_v3  ;;  %v2660_v3 = vld [vmem:[#allocation2 + $0x494] ss:$8 sps:$4 sm:$0xff]  }
 0x1d6   :  { %702 = vmatprep.subr.bf16.mxu0 %v2608_v5  ;;  %v2687_v5 = vld [vmem:[#allocation2 + $0x524] ss:$8 sps:$4 sm:$0xff]  }
 0x1d7   :  { %1539 = vmatprep.subr.bf16.mxu1 %v2687_v5  ;;  %v2718_v5 = vld [vmem:[#allocation5 + $0xb8] sm:$0xff]  }
 0x1d9   :  { %703 = vmatpush1.bf16.msra.mxu0 %v2606_v6  ;;  %v2658_v6 = vld [vmem:[#allocation2 + $0x490] ss:$8 sps:$4 sm:$0xff]  }
 0x1da   :  { %704 = vmatprep.subr.bf16.mxu0 %v2611_v8  ;;  %v2685_v8 = vld [vmem:[#allocation2 + $0x520] ss:$8 sps:$4 sm:$0xff]  }
 0x1db   :  { %1540 = vmatpush1.bf16.msra.mxu1 %v2685_v8 }
 0x1dd   :  { %705 = vmatpush1.bf16.msra.mxu0 %v2609_v9  ;;  %v2690_v9 = vld [vmem:[#allocation2 + $0x534] ss:$8 sps:$4 sm:$0xff]  }
 0x1de   :  { %706 = vmatprep.subr.bf16.mxu0 %v2614_v12  ;;  %v2666_v12 = vld [vmem:[#allocation2 + $0x4b4] ss:$8 sps:$4 sm:$0xff]   ;;  %1541 = vmatprep.subr.bf16.mxu1 %v2690_v9 }
 0x1e1   :  { %707 = vmatpush1.bf16.msra.mxu0 %v2612_v13  ;;  %v2688_v13 = vld [vmem:[#allocation2 + $0x530] ss:$8 sps:$4 sm:$0xff]  }
 0x1e2   :  { %2323 = vmatprep.subr.bf16.mxu0 %v2615_v15  ;;  %v2664_v15 = vld [vmem:[#allocation2 + $0x4b0] ss:$8 sps:$4 sm:$0xff]   ;;  %1542 = vmatpush1.bf16.msra.mxu1 %v2688_v13 }
 0x1e3   :  { %1543 = vmatprep.subr.bf16.mxu1 %v2693_v14 }
 0x1e4   :  { %709 = vmatmul.mubr.bf16.vlgmr.msra.gmra.mrb[4].mxu0 %v301_v16  ;;  %v2691_v16 = vld [vmem:[#allocation2 + $0x540] ss:$8 sps:$4 sm:$0xff]  }
 0x1e5   :  { %2324 = vmatpush3.bf16.msra.mxu0 %v2616_v11  ;;  %v2669_v11 = vld [vmem:[#allocation2 + $0x4c4] ss:$8 sps:$4 sm:$0xff]  }
 0x1e6   :  { %2325 = vmatprep.subr.bf16.mxu0 %v2617_v18  ;;  %v2696_v18 = vld [vmem:[#allocation2 + $0x554] ss:$8 sps:$4 sm:$0xff]   ;;  %1544 = vmatpush1.bf16.msra.mxu1 %v2691_v16 }
 0x1e7   :  { %1545 = vmatprep.subr.bf16.mxu1 %v2696_v18 }
 0x1e9   :  { %2326 = vmatpush3.bf16.msra.mxu0 %v2618_v19  ;;  %v2667_v19 = vld [vmem:[#allocation2 + $0x4c0] ss:$8 sps:$4 sm:$0xff]  }
 0x1ea   :  { %2327 = vmatprep.subr.bf16.mxu0 %v2619_v21  ;;  %v2672_v21 = vld [vmem:[#allocation2 + $0x4d4] ss:$8 sps:$4 sm:$0xff]  }
 0x1ed   :  { %2328 = vmatpush3.bf16.msra.mxu0 %v2620_v23  ;;  %v2694_v23 = vld [vmem:[#allocation2 + $0x550] ss:$8 sps:$4 sm:$0xff]  }
 0x1ee   :  { %2329 = vmatprep.subr.bf16.mxu0 %v2621_v24  ;;  %v2670_v24 = vld [vmem:[#allocation2 + $0x4d0] ss:$8 sps:$4 sm:$0xff]   ;;  %1546 = vmatpush1.bf16.msra.mxu1 %v2694_v23 }
 0x1f1   :  { %2330 = vmatpush3.bf16.msra.mxu0 %v2622_v26  ;;  %v2675_v26 = vld [vmem:[#allocation2 + $0x4e4] ss:$8 sps:$4 sm:$0xff]  }
 0x1f2   :  { %2331 = vmatprep.subr.bf16.mxu0 %v2623_v25  ;;  %v2673_v25 = vld [vmem:[#allocation2 + $0x4e0] ss:$8 sps:$4 sm:$0xff]  }
 0x1f5   :  { %2332 = vmatpush3.bf16.msra.mxu0 %v2624_v28  ;;  %v2678_v28 = vld [vmem:[#allocation2 + $0x4f4] ss:$8 sps:$4 sm:$0xff]  }
 0x1f6   :  { %2333 = vmatprep.subr.bf16.mxu0 %v2625_v29  ;;  %v2676_v29 = vld [vmem:[#allocation2 + $0x4f0] ss:$8 sps:$4 sm:$0xff]  }
 0x1f9   :  { %2334 = vmatpush3.bf16.msra.mxu0 %v2626_v31  ;;  %v2699_v31 = vld [vmem:[#allocation2 + $0x564] ss:$8 sps:$4 sm:$0xff]  }
 0x1fa   :  { %2335 = vmatprep.subr.bf16.mxu0 %v2627_v32  ;;  %v2697_v32 = vld [vmem:[#allocation2 + $0x560] ss:$8 sps:$4 sm:$0xff]   ;;  %1547 = vmatprep.subr.bf16.mxu1 %v2699_v31 }
 0x1fb   :  { %1548 = vmatpush1.bf16.msra.mxu1 %v2697_v32  ;;  %v2720_v32 = vld [vmem:[#allocation5 + $0x108] sm:$0xff]  }
 0x1fd   :  { %2336 = vmatpush3.bf16.msra.mxu0 %v2628_v33  ;;  %v2702_v33 = vld [vmem:[#allocation2 + $0x574] ss:$8 sps:$4 sm:$0xff]  }
 0x1fe   :  { %2337 = vmatprep.subr.bf16.mxu0 %v2629_v34  ;;  %v2700_v34 = vld [vmem:[#allocation2 + $0x570] ss:$8 sps:$4 sm:$0xff]   ;;  %1549 = vmatprep.subr.bf16.mxu1 %v2702_v33  ;;  %v2723_v33 = vld [vmem:[#allocation5 + $0x120] sm:$0xff]  }
 0x1ff   :  { %1550 = vmatpush1.bf16.msra.mxu1 %v2700_v34  ;;  %v2724_v34 = vld [vmem:[#allocation5 + $0x128] sm:$0xff]  }
 0x201   :  { %2338 = vmatpush3.bf16.msra.mxu0 %v2630_v35  ;;  %v303_v35 = vld [vmem:[%s2974_s5 + $0x4] sm:$0x3] }
 0x202   :  { %1736 = vmatprep.subr.bf16.mxu0 %v2633_v36  ;;  %v308_v36 = vrot.slane %v303_v35, %v2912_v20  ;;  %v312_v37 = vrot.slane %v303_v35, %v2920_v22  ;;  %v2725_v35 = vld [vmem:[#allocation5 + $0x130] sm:$0xff]  }
 0x21b   :  { %v1217_v40 = vpop.f32.mrb[4].mxu1 }
 0x21c   :  { %v2398_v41 = vadd.f32 %v1217_v40, %v815_v38  ;;  %v1219_v42 = vpop.f32.mrb[5].mxu1 }
 0x21d   :  { %v2399_v43 = vadd.f32 %v1219_v42, %v819_v39  ;;  %v1221_v44 = vpop.f32.mrb[6].mxu1 }
 0x21e   :  { %v1224_v27 = vmax.f32 %v2398_v41, 0.0  ;;  %v1222_v45 = vpop.f32.mrb[7].mxu1 }
 0x21f   :  { %v1225_v46 = vmax.f32 %v2399_v43, 0.0 }
 0x220   :  { %v1258_v17 = vpack.c.bf16 %v1224_v27, %v1224_v27 }
 0x221   :  { %v1259_v47 = vpack.c.bf16 %v1225_v46, %v1225_v46 }
 0x223   :  { %1395 = vmatprep.mubr.bf16.mxu0 %v1259_v47 }
 0x224   :  { %1396 = vmatmul.mubr.bf16.vlgmr.msra.gmra.mrb[8].mxu0 %v1258_v17 }
 0x225   :  { %1737 = vmatpush1.bf16.msra.mxu0 %v2631_v48  ;;  %v2232_v48 = vld [vmem:[%s2974_s5 + $0x8] ss:$0 sm:$0xff] }
 0x226   :  { %1738 = vmatprep.subr.bf16.mxu0 %v2636_v49 }
 0x229   :  { %1739 = vmatpush1.bf16.msra.mxu0 %v2634_v50 }
 0x22a   :  { %1740 = vmatprep.subr.bf16.mxu0 %v2639_v51 }
 0x22d   :  { %1741 = vmatpush1.bf16.msra.mxu0 %v2637_v52 }
 0x22e   :  { %1742 = vmatprep.subr.bf16.mxu0 %v2642_v53 }
 0x231   :  { %1743 = vmatpush1.bf16.msra.mxu0 %v2640_v30 }
 0x232   :  { %1744 = vmatprep.subr.bf16.mxu0 %v2645_v54  ;;  %v2703_v54 = vld [vmem:[#allocation5 + $0xc0] sm:$0xff]  }
 0x233   :  { %2345 = vmatprep.subr.bf16.mxu1 %v2703_v54 }
 0x235   :  { %1745 = vmatpush1.bf16.msra.mxu0 %v2643_v55  ;;  %v2704_v55 = vld [vmem:[#allocation5 + $0x80] sm:$0xff]  }
 0x236   :  { %1746 = vmatprep.subr.bf16.mxu0 %v2648_v56  ;;  %v2705_v56 = vld [vmem:[#allocation5 + $0xc8] sm:$0xff]  }
 0x239   :  { %1747 = vmatpush1.bf16.msra.mxu0 %v2646_v57  ;;  %v2706_v57 = vld [vmem:[#allocation5 + $0x88] sm:$0xff]  }
 0x23a   :  { %1748 = vmatprep.subr.bf16.mxu0 %v2651_v58  ;;  %v2707_v58 = vld [vmem:[#allocation5 + $0xd0] sm:$0xff]  }
 0x23d   :  { %1749 = vmatpush1.bf16.msra.mxu0 %v2649_v59  ;;  %v2708_v59 = vld [vmem:[#allocation5 + $0x90] sm:$0xff]  }
 0x23e   :  { %1750 = vmatprep.subr.bf16.mxu0 %v2654_v60  ;;  %v2709_v60 = vld [vmem:[#allocation5 + $0xd8] sm:$0xff]  }
 0x241   :  { %1751 = vmatpush1.bf16.msra.mxu0 %v2652_v61  ;;  %v2710_v61 = vld [vmem:[#allocation5 + $0x98] sm:$0xff]  }
 0x242   :  { %1752 = vmatprep.subr.bf16.mxu0 %v2657_v62  ;;  %v2711_v62 = vld [vmem:[#allocation5 + $0xe0] sm:$0xff]  }
 0x245   :  { %1753 = vmatpush1.bf16.msra.mxu0 %v2655_v1  ;;  %v2714_v1 = vld [vmem:[#allocation5 + $0xa8] sm:$0xff]  }
 0x246   :  { %1754 = vmatprep.subr.bf16.mxu0 %v2660_v3  ;;  %v2716_v3 = vld [vmem:[#allocation5 + $0xb0] sm:$0xff]  }
 0x249   :  { %1755 = vmatpush1.bf16.msra.mxu0 %v2658_v6  ;;  %v2807_v6 = vmov 0.0  }
 0x24a   :  { %1756 = vmatprep.subr.bf16.mxu0 %v2663_v7 }
 0x24d   :  { %1757 = vmatpush1.bf16.msra.mxu0 %v2661_v10 }
 0x24e   :  { %1758 = vmatprep.subr.bf16.mxu0 %v2666_v12  ;;  %v1777_v12 = vld [vmem:[%s2974_s5 + $0x9] sm:$0x3] }
 0x24f   :  { %v1782_v13 = vrot.slane %v1777_v12, %v2912_v20  ;;  %v2721_v20 = vld [vmem:[#allocation5 + $0x110] sm:$0xff]  }
 0x251   :  { %1759 = vmatpush1.bf16.msra.mxu0 %v2664_v15  ;;  %v1786_v15 = vrot.slane %v1777_v12, %v2920_v22  ;;  %v2722_v22 = vld [vmem:[#allocation5 + $0x118] sm:$0xff]  }
 0x252   :  { %1760 = vmatprep.subr.bf16.mxu0 %v2669_v11 }
 0x255   :  { %1761 = vmatpush1.bf16.msra.mxu0 %v2667_v19 }
 0x256   :  { %1762 = vmatprep.subr.bf16.mxu0 %v2672_v21 }
 0x259   :  { %1763 = vmatpush1.bf16.msra.mxu0 %v2670_v24 }
 0x25a   :  { %1764 = vmatprep.subr.bf16.mxu0 %v2675_v26 }
 0x25d   :  { %1765 = vmatpush1.bf16.msra.mxu0 %v2673_v25 }
 0x25e   :  { %1766 = vmatprep.subr.bf16.mxu0 %v2678_v28 }
 0x261   :  { %1767 = vmatpush1.bf16.msra.mxu0 %v2676_v29  ;;  %v2719_v29 = vld [vmem:[#allocation5 + $0x100] sm:$0xff]  }
 0x2b7   :  { %v710_v38 = vpop.f32.mrb[4].mxu0 }
 0x2b8   :  { %v2396_v39 = vadd.f32 %v710_v38, %v308_v36  ;;  %v712_v40 = vpop.f32.mrb[5].mxu0  ;;  %v2726_v36 = vld [vmem:[#allocation5 + $0x138] sm:$0xff]   ;;  %v2297_v38 = vld [vmem:[%s2974_s5 + $0xb] ss:$0 sm:$0xff] }
 0x2b9   :  { %v2397_v41 = vadd.f32 %v712_v40, %v312_v37  ;;  %v714_v42 = vpop.f32.mrb[6].mxu0 }
 0x2ba   :  { %v717_v43 = vmax.f32 %v2396_v39, 0.0  ;;  %v715_v44 = vpop.f32.mrb[7].mxu0 }
 0x2bb   :  { %v718_v27 = vmax.f32 %v2397_v41, 0.0 }
 0x2bc   :  { %v1436_v46 = vpack.c.bf16 %v717_v43, %v717_v43 }
 0x2bd   :  { %v1437_v45 = vpack.c.bf16 %v718_v27, %v718_v27 }
 0x2bf   :  { %1768 = vmatprep.mubr.bf16.mxu0 %v1437_v45  ;;  %v2314_v45 = vld [vmem:[%s2974_s5 + $0xc] ss:$0 sm:$0xff] }
 0x2c0   :  { %1769 = vmatmul.mubr.bf16.vlgmr.msra.gmra.mrb[12].mxu0 %v1436_v46 }
 0x2f7   :  { %v2339_v47 = vpop.f32.mrb[8].mxu0 }
 0x2f8   :  { %v2340_v17 = vpop.f32.mrb[9].mxu0 }
 0x2f9   :  { %v2341_v49 = vadd.f32 %v2340_v17, %v2339_v47  ;;  %v2342_v50 = vpop.f32.mrb[10].mxu0 }
 0x2fa   :  { %v2343_v51 = vpop.f32.mrb[11].mxu0 }
 0x2fb   :  { %v1398_v52 = vadd.f32 %v2341_v49, %v2232_v48 }
 0x2fd   :  { %v1403_v53 = vmax.f32 %v1398_v52, 0.0 }
 0x2ff   :  { %v1454_v30 = vpack.c.bf16 %v1403_v53, %v1403_v53 }
 0x301   :  { %1568 = vmatmul.mubr.bf16.vlgmr.msra.gmra.mrb[8].mxu1 %v1454_v30 }
 0x302   :  { %2346 = vmatpush3.bf16.msra.mxu1 %v2704_v55 }
 0x303   :  { %2347 = vmatprep.subr.bf16.mxu1 %v2705_v56 }
 0x306   :  { %2348 = vmatpush3.bf16.msra.mxu1 %v2706_v57 }
 0x307   :  { %2349 = vmatprep.subr.bf16.mxu1 %v2707_v58 }
 0x30a   :  { %2350 = vmatpush3.bf16.msra.mxu1 %v2708_v59 }
 0x30b   :  { %2351 = vmatprep.subr.bf16.mxu1 %v2709_v60 }
 0x30e   :  { %2352 = vmatpush3.bf16.msra.mxu1 %v2710_v61 }
 0x30f   :  { %2353 = vmatprep.subr.bf16.mxu1 %v2711_v62 }
 0x312   :  { %2354 = vmatpush3.bf16.msra.mxu1 %v2712_v63 }
 0x313   :  { %2355 = vmatprep.subr.bf16.mxu1 %v2713_v0 }
 0x316   :  { %2356 = vmatpush3.bf16.msra.mxu1 %v2714_v1 }
 0x317   :  { %2357 = vmatprep.subr.bf16.mxu1 %v2715_v2 }
 0x31a   :  { %2358 = vmatpush3.bf16.msra.mxu1 %v2716_v3 }
 0x31b   :  { %2359 = vmatprep.subr.bf16.mxu1 %v2717_v4 }
 0x31e   :  { %2360 = vmatpush3.bf16.msra.mxu1 %v2718_v5 }
 0x31f   :  { %2376 = vmatprep.subr.bf16.mxu1 %v2807_v6 }
 0x393   :  { %v1770_v7 = vpop.f32.mrb[12].mxu0 }
 0x394   :  { %v1772_v8 = vpop.f32.mrb[13].mxu0 }
 0x395   :  { %v1774_v9 = vpop.f32.mrb[14].mxu0 }
 0x396   :  { %v1775_v10 = vpop.f32.mrb[15].mxu0 }
 0x3d4   :  { %v1569_v14 = vpop.f32.mrb[8].mxu1 }
 0x3d5   :  { %v1771_v11 = vadd.f32 %v1770_v7, %v1569_v14  ;;  %v1571_v16 = vpop.f32.mrb[9].mxu1 }
 0x3d6   :  { %v1773_v18 = vadd.f32 %v1772_v8, %v1571_v16  ;;  %v1573_v19 = vpop.f32.mrb[10].mxu1 }
 0x3d7   :  { %v1789_v21 = vadd.f32 %v1782_v13, %v1771_v11  ;;  %v1574_v23 = vpop.f32.mrb[11].mxu1 }
 0x3d8   :  { %v1790_v24 = vadd.f32 %v1786_v15, %v1773_v18 }
 0x3d9   :  { %v1791_v26 = vmax.f32 %v1789_v21, 0.0 }
 0x3da   :  { %v1792_v25 = vmax.f32 %v1790_v24, 0.0 }
 0x3db   :  { %v1825_v31 = vpack.c.bf16 %v1791_v26, %v1791_v26 }
 0x3dc   :  { %v1826_v28 = vpack.c.bf16 %v1792_v25, %v1792_v25 }
 0x3de   :  { %1962 = vmatprep.mubr.bf16.mxu1 %v1826_v28 }
 0x3df   :  { %1963 = vmatmul.mubr.bf16.vlgmr.msra.gmra.mrb[12].mxu1 %v1825_v31 }
 0x3e0   :  { %2377 = vmatpush3.bf16.msra.mxu1 %v2719_v29  ;;  %2392 = vmatprep.mubr.msk.bf16.mxu1 %vm2808_vm4, %v2807_v6 }
 0x3e1   :  { %2378 = vmatprep.subr.bf16.mxu1 %v2807_v6 }
 0x3e4   :  { %2379 = vmatpush3.bf16.msra.mxu1 %v2720_v32 }
 0x3e5   :  { %2380 = vmatprep.subr.bf16.mxu1 %v2807_v6 }
 0x3e8   :  { %2381 = vmatpush3.bf16.msra.mxu1 %v2721_v20 }
 0x3e9   :  { %2382 = vmatprep.subr.bf16.mxu1 %v2807_v6 }
 0x3ec   :  { %2383 = vmatpush3.bf16.msra.mxu1 %v2722_v22 }
 0x3ed   :  { %2384 = vmatprep.subr.bf16.mxu1 %v2807_v6 }
 0x3f0   :  { %2385 = vmatpush3.bf16.msra.mxu1 %v2723_v33 }
 0x3f1   :  { %2386 = vmatprep.subr.bf16.mxu1 %v2807_v6 }
 0x3f4   :  { %2387 = vmatpush3.bf16.msra.mxu1 %v2724_v34 }
 0x3f5   :  { %2388 = vmatprep.subr.bf16.mxu1 %v2807_v6 }
 0x3f8   :  { %2389 = vmatpush3.bf16.msra.mxu1 %v2725_v35 }
 0x3f9   :  { %2390 = vmatprep.subr.bf16.mxu1 %v2807_v6 }
 0x3fc   :  { %2391 = vmatpush3.bf16.msra.mxu1 %v2726_v36 }
 0x4b2   :  { %v2361_v37 = vpop.f32.mrb[12].mxu1 }
 0x4b3   :  { %v2362_v39 = vpop.f32.mrb[13].mxu1 }
 0x4b4   :  { %v2363_v40 = vadd.f32 %v2362_v39, %v2361_v37  ;;  %v2364_v41 = vpop.f32.mrb[14].mxu1 }
 0x4b5   :  { %v2365_v42 = vpop.f32.mrb[15].mxu1 }
 0x4b6   :  { %v1965_v43 = vadd.f32 %v2363_v40, %v2297_v38 }
 0x4b8   :  { %v1970_v44 = vmax.f32 %v1965_v43, 0.0 }
 0x4ba   :  { %v1987_v27 = vpack.c.bf16 %v1970_v44, %v1970_v44 }
 0x4bc   :  { %2393 = vmatmul.mubr.bf16.vlgmr.msra.gmra.mrb[16].mxu1 %v1987_v27 }
 0x58f   :  { %v2077_v46 = vpop.f32.mrb[16].mxu1 }
 0x590   :  { %v2078_v47 = vadd.f32 %v2314_v45, %v2077_v46  ;;  %v2394_v48 = vpop.f32.mrb[17].mxu1 }
 0x591   :  { %v2080_v17 = vpop.f32.mrb[18].mxu1 }
 0x592   :  { %2083 = vst [vmem:[#allocation7] sm:$0x3] %v2078_v47  ;;  %v2395_v49 = vpop.f32.mrb[19].mxu1 }
 0x593   :  { %2782 = shalt.err (!%p2779_p6)
}
 0x594   :  { %s2783_s5 = scalar_lea.hbm %s2975_s6, 32 }
 0x595   :  { %p2784_p7 = scmp.ne.s32.totalorder %s2975_s6, %s2783_s5  ;;  %p2787_p8 = scmp.lt.u32.totalorder %s2783_s5, %s2975_s6 }
 0x597   :  { %p2789_p9 = pnand %p2787_p8, %p2784_p7 }
 0x599   :  { %2792 = shalt.err (!%p2789_p9)
}
 0x59a   :  { %2093 = dma.vmem_to_hbm [thread:$0]  %s2091_s19, 32, %s2975_s6, [#allocation4]  }
 0x59b   :  { %2797 = dma.done.wait [#allocation4], 32  }
 0x59c   :  { %2798 = vsyncadd [#allocation4], 4294967264 }
 0x59d   :  { %2097 = vsyncpa [#allocation3], 1 }
 0x59e   :  { %2098 = vsyncpa [#allocation6], 1 }
 0x59f   :  { %2099 = vsyncpa [#allocation4], 1 }

</bundles_post_ra>
